<compile_context>
chip_gen: v7x
topology: tpu7x:2x2x1
jax: 0.10.0
libtpu: 0.0.40
codegen_flags: <defaults>
</compile_context>

<pallas_src>
import functools

import jax
import jax.numpy as jnp
from jax.experimental import pallas as pl
from jax.experimental.pallas import tpu as pltpu


def _rdown(x, m):
    return (x // m) * m


def _vmem_budget():
    """Per-generation scoped-VMEM limit and per-tile byte target.

    v5e/v6e (128 MiB physical) -> 64 MiB scoped limit, ~8 MiB tiles;
    v7x (64 MiB physical)      -> 32 MiB scoped limit, ~4 MiB tiles.
    Double-buffered input + output (4x tile) stays at <= half the limit."""
    cap = 64 * 1024 * 1024  # conservative fallback = v7x physical VMEM
    try:
        info = pltpu.get_tpu_info()
        cap_attr = getattr(info, "vmem_capacity_bytes", None)
        if cap_attr:
            cap = int(cap_attr)
    except Exception:
        pass
    limit = min(64 * 1024 * 1024, max(16 * 1024 * 1024, cap // 2))
    target_tile = min(8 * 1024 * 1024, limit // 8)
    return limit, target_tile


def _plan_affine_tiles(r, s, itemsize, target_bytes, min_tile_bytes=256 * 1024):
    """Pick (row_blk, s_blk) for the flattened (R, S) elementwise pass.

    Prefers full-S tiles (one contiguous DMA per row group) and blocks over
    rows; splits S only when a few full rows already exceed the byte budget.
    Row blocks are multiples of the sublane unit (or full R), lane blocks are
    multiples of 128 (or full S).  Tail blocks may be partial: the affine is
    elementwise, so padded reads / clipped writes are safe."""
    sub = max(8, 32 // itemsize)  # sublane granularity for this dtype

    # lane (last) axis
    if s <= 128 or sub * s * itemsize <= target_bytes:
        s_blk = s
    else:
        s_blk = max(128, _rdown(target_bytes // (sub * itemsize), 128))
        s_blk = min(s_blk, _rdown(s, 128))

    # sublane (row) axis
    if r <= sub:
        row_blk = r
    else:
        rows_fit = max(sub, _rdown(target_bytes // (s_blk * itemsize), sub))
        row_blk = min(rows_fit, _rdown(r, sub))
        if s_blk == s:
            # Keep >= ~4 row blocks so the "parallel" axis can shard across
            # v7x's two TensorCores, as long as tiles stay big enough that the
            # ~0.35 us per-grid-step overhead is amortized.
            cap = max(sub, _rdown(r // 4, sub))
            if cap * s_blk * itemsize >= min_tile_bytes:
                row_blk = min(row_blk, cap)
    return row_blk, s_blk


def _plan_init_sblk(c, s, itemsize, target_bytes):
    """Lane block for the (1, C, s_blk) init-reduction tiles (byte-budgeted)."""
    if s <= 128 or c * s * itemsize <= target_bytes:
        return s
    s_blk = max(128, _rdown(target_bytes // (c * itemsize), 128))
    return min(s_blk, _rdown(s, 128))


def _init_kernel(z_ref, sum_ref, sumsq_ref, *, s_total, s_blk, mask_tail):
    """Per-batch partial (sum, sum-of-squares) reduction over channels.

    Grid (B, cdiv(S, s_blk)); the per-batch (1, C, 1) output blocks stay
    resident in VMEM across the S ("arbitrary") axis and act as accumulators,
    so the batch axis can be "parallel" (each batch owns its own blocks)."""
    j = pl.program_id(1)

    @pl.when(j == 0)
    def _():
        sum_ref[...] = jnp.zeros_like(sum_ref)
        sumsq_ref[...] = jnp.zeros_like(sumsq_ref)

    z = z_ref[0].astype(jnp.float32)  # (C, s_blk)
    if mask_tail:
        lane = jax.lax.broadcasted_iota(jnp.int32, z.shape, 1)
        z = jnp.where(j * s_blk + lane < s_total, z, 0.0)
    sum_ref[...] += jnp.sum(z, axis=1, keepdims=True)[None]        # (1, C, 1)
    sumsq_ref[...] += jnp.sum(z * z, axis=1, keepdims=True)[None]  # (1, C, 1)


def _affine_kernel(z_ref, sb_ref, out_ref):
    """Hot path: one broadcasted FMA per element, out = a * z + b."""
    sb = sb_ref[...]                              # (row_blk, 2) f32, resident
    z = z_ref[...].astype(jnp.float32)            # (row_blk, s_blk)
    out = sb[:, 0:1] * z + sb[:, 1:2]
    out_ref[...] = out.astype(out_ref.dtype)


def actnorm_param_forward(z, con, shift, log_scale, *,
                          is_initialized=False, sample=False):
    """Mirrors ActNormParam.forward.

    z:         (B, C, H, W)   activations (any float dtype; kept native for HBM I/O)
    con:       (2*C,)         -> chunked into (log_scale_mod, shift_mod)
    shift:     (1, C, 1, 1)   module parameter
    log_scale: (1, C, 1, 1)   module parameter
    Returns (z_out (B, C, H, W), ldj (B,)).
    """
    # TODO(synk): the torch module mutates self.shift / self.log_scale and the
    # is_initialized buffer in place; here state is functional — the caller
    # owns persisting the initialized parameters.
    b, c, h, w = z.shape
    s = h * w
    r = b * c
    itemsize = jnp.dtype(z.dtype).itemsize
    vmem_limit, target_tile = _vmem_budget()

    lsm, shm = jnp.split(con.astype(jnp.float32), 2, axis=0)   # (C,), (C,)
    shift_c = shift.reshape(c).astype(jnp.float32)
    log_scale_c = log_scale.reshape(c).astype(jnp.float32)

    if not is_initialized:
        # Streamed per-batch partial reduction (one-time cost).
        z3 = z.reshape(b, c, s)
        s_blk = _plan_init_sblk(c, s, itemsize, target_tile)
        mask_tail = (s % s_blk) != 0
        init_kernel = functools.partial(
            _init_kernel, s_total=s, s_blk=s_blk, mask_tail=mask_tail)
        sum_bc, sumsq_bc = pl.pallas_call(
            init_kernel,
            out_shape=(jax.ShapeDtypeStruct((b, c, 1), jnp.float32),
                       jax.ShapeDtypeStruct((b, c, 1), jnp.float32)),
            grid=(b, pl.cdiv(s, s_blk)),
            in_specs=[pl.BlockSpec((1, c, s_blk), lambda i, j: (i, 0, j))],
            out_specs=(pl.BlockSpec((1, c, 1), lambda i, j: (i, 0, 0)),
                       pl.BlockSpec((1, c, 1), lambda i, j: (i, 0, 0))),
            compiler_params=pltpu.CompilerParams(
                dimension_semantics=("parallel", "arbitrary"),
                vmem_limit_bytes=vmem_limit),
        )(z3)

        # Final O(C) statistics, hoisted out of the grid (wrapper side).
        n = jnp.float32(b * s)
        total = jnp.sum(sum_bc[:, :, 0], axis=0)       # (C,)
        total_sq = jnp.sum(sumsq_bc[:, :, 0], axis=0)  # (C,)
        mean = total / n
        # One-pass unbiased variance (matches torch z.std([0, 2, 3])).
        # TODO(synk): n == 1 divides by zero and a constant channel gives
        # inf/NaN exactly like the torch reference; no extra guarding here.
        var = (total_sq - n * mean * mean) / (n - 1.0)
        std = jnp.sqrt(var)
        log_scale_c = -jnp.log(std + 1e-6)
        shift_c = -(mean / std)  # mean(z / std) == mean(z) / std per channel

    # Fold per-channel params once (O(C)); the hot kernel is one FMA/element.
    ls_tot = log_scale_c + lsm                           # (C,)
    bias_c = shift_c + shm                               # (C,)
    if not sample:
        a_c = jnp.exp(ls_tot)
        b_c = bias_c
        sign = 1.0
    else:
        a_c = jnp.exp(-ls_tot)                           # multiply, not divide
        b_c = -a_c * bias_c                              # (z-b)/e^ls == a*z + (-a*b)
        sign = -1.0

    # Flatten (B, C, S) -> (B*C, S): tile size decoupled from C, per-row
    # params are a trivial broadcast; flatten is free (already contiguous).
    z2 = z.reshape(r, s)
    sb = jnp.stack([jnp.tile(a_c, b), jnp.tile(b_c, b)], axis=1)  # (R, 2) f32

    row_blk, s_blk = _plan_affine_tiles(r, s, itemsize, target_tile)
    grid = (pl.cdiv(r, row_blk), pl.cdiv(s, s_blk))
    z_out2 = pl.pallas_call(
        _affine_kernel,
        out_shape=jax.ShapeDtypeStruct((r, s), z.dtype),
        grid=grid,
        in_specs=[pl.BlockSpec((row_blk, s_blk), lambda i, j: (i, j)),
                  pl.BlockSpec((row_blk, 2), lambda i, j: (i, 0))],
        out_specs=pl.BlockSpec((row_blk, s_blk), lambda i, j: (i, j)),
        compiler_params=pltpu.CompilerParams(
            dimension_semantics=("parallel", "parallel"),
            vmem_limit_bytes=vmem_limit),
    )(z2, sb)

    # ldj depends only on the per-channel params, not on z — computed here.
    ldj = (sign * float(h * w) * jnp.sum(ls_tot)) * jnp.ones((b,), jnp.float32)

    return z_out2.reshape(b, c, h, w), ldj


if __name__ == "__main__":
    B, C, H, W = 2, 4, 16, 16
    key = jax.random.PRNGKey(0)
    k1, k2 = jax.random.split(key)
    z = jax.random.normal(k1, (B, C, H, W), dtype=jnp.float32) * 1.7 + 0.3
    con = jax.random.normal(k2, (2 * C,), dtype=jnp.float32) * 0.1

    # deterministic module parameters (as in __init__: zeros, uninitialized)
    shift = jnp.zeros((1, C, 1, 1), jnp.float32)
    log_scale = jnp.zeros((1, C, 1, 1), jnp.float32)

    # --- forward path (move_towards_base), uninitialized -> data-dependent init
    z_out, ldj = actnorm_param_forward(z, con, shift, log_scale,
                                       is_initialized=False, sample=False)
    jax.block_until_ready((z_out, ldj))

    # pure-JAX reference of the torch semantics
    std = jnp.std(z, axis=(0, 2, 3), ddof=1)
    mu = jnp.mean(z / std[None, :, None, None], axis=(0, 2, 3))
    ls0, sh0 = -jnp.log(std + 1e-6), -mu
    lsm_r, shm_r = jnp.split(con, 2)
    ls_tot_r, sh_tot_r = ls0 + lsm_r, sh0 + shm_r
    z_ref = jnp.exp(ls_tot_r)[None, :, None, None] * z + sh_tot_r[None, :, None, None]
    ldj_ref = H * W * jnp.sum(ls_tot_r) * jnp.ones((B,), jnp.float32)

    assert jnp.allclose(z_out, z_ref, atol=1e-4, rtol=1e-4), "forward z mismatch"
    assert jnp.allclose(ldj, ldj_ref, atol=1e-3, rtol=1e-4), "forward ldj mismatch"

    # --- reverse path (sample=True), already initialized params
    shift2 = sh0.reshape(1, C, 1, 1)
    log_scale2 = ls0.reshape(1, C, 1, 1)
    z_rev, ldj_rev = actnorm_param_forward(z, con, shift2, log_scale2,
                                           is_initialized=True, sample=True)
    jax.block_until_ready((z_rev, ldj_rev))

    z_rev_ref = (z - sh_tot_r[None, :, None, None]) / jnp.exp(ls_tot_r)[None, :, None, None]
    ldj_rev_ref = -H * W * jnp.sum(ls_tot_r) * jnp.ones((B,), jnp.float32)
    assert jnp.allclose(z_rev, z_rev_ref, atol=1e-4, rtol=1e-4), "reverse z mismatch"
    assert jnp.allclose(ldj_rev, ldj_rev_ref, atol=1e-3, rtol=1e-4), "reverse ldj mismatch"

    print("KERNEL_OK")
</pallas_src>

<mosaic_0001>
module attributes {stable_mosaic.version = 11 : i64} {
  func.func @_init_kernel(%arg0: i32, %arg1: i32, %arg2: memref<1x4x256xf32, #tpu.memory_space<vmem>>, %arg3: memref<1x4x1xf32, #tpu.memory_space<vmem>>, %arg4: memref<1x4x1xf32, #tpu.memory_space<vmem>>) attributes {dimension_semantics = [#tpu.dimension_semantics<parallel>, #tpu.dimension_semantics<arbitrary>], iteration_bounds = array<i64: 2, 1>, scalar_prefetch = 0 : i64, scratch_operands = 0 : i64, tpu.core_type = #tpu.core_type<tc>, window_params = [{transform_indices = @transform_0, window_bounds = array<i64: 1, 4, 256>}, {transform_indices = @transform_1, window_bounds = array<i64: 1, 4, 1>}, {transform_indices = @transform_2, window_bounds = array<i64: 1, 4, 1>}]} {
    %c0_i32 = arith.constant 0 : i32
    %0 = arith.cmpi eq, %arg1, %c0_i32 : i32
    %1 = arith.extui %0 : i1 to i32
    %c0_i32_0 = arith.constant 0 : i32
    %2 = arith.cmpi ne, %1, %c0_i32_0 : i32
    scf.if %2 {
      %cst_16 = arith.constant 0.000000e+00 : f32
      %18 = vector.broadcast %cst_16 : f32 to vector<1x4x1xf32>
      %c0_17 = arith.constant 0 : index
      %c0_18 = arith.constant 0 : index
      %c0_19 = arith.constant 0 : index
      %19 = vector.load %arg3[%c0_17, %c0_18, %c0_19] : memref<1x4x1xf32, #tpu.memory_space<vmem>>, vector<1x4x1xf32>
      tpu.vector_store %arg3[%c0_17, %c0_18, %c0_19], %18 {strides = array<i32>} : memref<1x4x1xf32, #tpu.memory_space<vmem>>, vector<1x4x1xf32>,
      %cst_20 = arith.constant 0.000000e+00 : f32
      %20 = vector.broadcast %cst_20 : f32 to vector<1x4x1xf32>
      %c0_21 = arith.constant 0 : index
      %c0_22 = arith.constant 0 : index
      %c0_23 = arith.constant 0 : index
      %21 = vector.load %arg4[%c0_21, %c0_22, %c0_23] : memref<1x4x1xf32, #tpu.memory_space<vmem>>, vector<1x4x1xf32>
      tpu.vector_store %arg4[%c0_21, %c0_22, %c0_23], %20 {strides = array<i32>} : memref<1x4x1xf32, #tpu.memory_space<vmem>>, vector<1x4x1xf32>,
    } else {
    }
    %c0 = arith.constant 0 : index
    %c0_1 = arith.constant 0 : index
    %c0_2 = arith.constant 0 : index
    %3 = vector.load %arg2[%c0, %c0_1, %c0_2] : memref<1x4x256xf32, #tpu.memory_space<vmem>>, vector<1x4x256xf32>
    %4 = vector.shape_cast %3 : vector<1x4x256xf32> to vector<4x256xf32>
    %c0_3 = arith.constant 0 : index
    %c0_4 = arith.constant 0 : index
    %c0_5 = arith.constant 0 : index
    %5 = vector.load %arg3[%c0_3, %c0_4, %c0_5] : memref<1x4x1xf32, #tpu.memory_space<vmem>>, vector<1x4x1xf32>
    %cst = arith.constant dense<0.000000e+00> : vector<4xf32>
    %6 = vector.multi_reduction <add>, %4, %cst [1] : vector<4x256xf32> to vector<4xf32>
    %7 = vector.shape_cast %6 : vector<4xf32> to vector<4x1xf32>
    %8 = vector.shape_cast %7 : vector<4x1xf32> to vector<1x4x1xf32>
    %9 = arith.addf %5, %8 : vector<1x4x1xf32>
    %c0_6 = arith.constant 0 : index
    %c0_7 = arith.constant 0 : index
    %c0_8 = arith.constant 0 : index
    %10 = vector.load %arg3[%c0_6, %c0_7, %c0_8] : memref<1x4x1xf32, #tpu.memory_space<vmem>>, vector<1x4x1xf32>
    tpu.vector_store %arg3[%c0_6, %c0_7, %c0_8], %9 {strides = array<i32>} : memref<1x4x1xf32, #tpu.memory_space<vmem>>, vector<1x4x1xf32>,
    %c0_9 = arith.constant 0 : index
    %c0_10 = arith.constant 0 : index
    %c0_11 = arith.constant 0 : index
    %11 = vector.load %arg4[%c0_9, %c0_10, %c0_11] : memref<1x4x1xf32, #tpu.memory_space<vmem>>, vector<1x4x1xf32>
    %12 = arith.mulf %4, %4 : vector<4x256xf32>
    %cst_12 = arith.constant dense<0.000000e+00> : vector<4xf32>
    %13 = vector.multi_reduction <add>, %12, %cst_12 [1] : vector<4x256xf32> to vector<4xf32>
    %14 = vector.shape_cast %13 : vector<4xf32> to vector<4x1xf32>
    %15 = vector.shape_cast %14 : vector<4x1xf32> to vector<1x4x1xf32>
    %16 = arith.addf %11, %15 : vector<1x4x1xf32>
    %c0_13 = arith.constant 0 : index
    %c0_14 = arith.constant 0 : index
    %c0_15 = arith.constant 0 : index
    %17 = vector.load %arg4[%c0_13, %c0_14, %c0_15] : memref<1x4x1xf32, #tpu.memory_space<vmem>>, vector<1x4x1xf32>
    tpu.vector_store %arg4[%c0_13, %c0_14, %c0_15], %16 {strides = array<i32>} : memref<1x4x1xf32, #tpu.memory_space<vmem>>, vector<1x4x1xf32>,
    return
  }
  func.func @transform_0(%arg0: i32, %arg1: i32) -> (i32, i32, i32) {
    %c0_i32 = arith.constant 0 : i32
    %c0_i32_0 = arith.constant 0 : i32
    return %arg0, %c0_i32, %arg1 : i32, i32, i32
  }
  func.func @transform_1(%arg0: i32, %arg1: i32) -> (i32, i32, i32) {
    %c0_i32 = arith.constant 0 : i32
    %c0_i32_0 = arith.constant 0 : i32
    %c0_i32_1 = arith.constant 0 : i32
    return %arg0, %c0_i32, %c0_i32_0 : i32, i32, i32
  }
  func.func @transform_2(%arg0: i32, %arg1: i32) -> (i32, i32, i32) {
    %c0_i32 = arith.constant 0 : i32
    %c0_i32_0 = arith.constant 0 : i32
    %c0_i32_1 = arith.constant 0 : i32
    return %arg0, %c0_i32, %c0_i32_0 : i32, i32, i32
  }
}

</mosaic_0001>

<bundles_post_ra>
// kernel: tpu_custom_call.1
= control target key start
LH: loop header
LB: loop body
LE: loop exit
PB: predicated region body
PF: predicated region fallthrough
CT: control target
= control target key end

     0   :  { %8 = vsyncpa [#allocation3], 0  ;;  %s630_s0 = inlined_call_operand.hbm [shape: f32[2,4,256], index: 0, kind: input, shape index: {}]   ;;  %s631_s1 = inlined_call_operand.vmem [shape: f32[2,4,1], index: 1, kind: output, shape index: {0}]   ;;  %s632_s2 = inlined_call_operand.vmem [shape: f32[2,4,1], index: 2, kind: output, shape index: {1}]  }
   0x1   :  { %10 = vsyncpa [#allocation3 + $0x1], 0  ;;  %s498_s9 = smov 0   ;;  %s500_s10 = smov 0  }
   0x2   :  { %s502_s11 = smov 0   ;;  %s504_s12 = smov 0  }
   0x3   :  { %s506_s13 = smov 0   ;;  %s508_s14 = smov 0  }
   0x4 LB: > { %s328_s15 = sadd.s32 4294967295, %s479_s14   ;;  %s28_s16 = sadd.s32 1, %s475_s13  ;;  %s479_s14 = sphi %s508_s14, %s16_s14   ;;  %s475_s13 = sphi %s506_s13, %s642_s13   ;;  %s471_s12 = sphi %s504_s12, %s641_s12   ;;  %s467_s11 = sphi %s502_s11, %s640_s11   ;;  %s463_s10 = sphi %s500_s10, %s639_s10   ;;  %s459_s9 = sphi %s498_s9, %s638_s9  }
   0x5   : > { %p30_p0 = scmp.ge.s32.totalorder %s28_s16, 2  ;;  %s37_s17 = sadd.s32 1, %s467_s11 }
   0x6   : > { %p44_p1 = scmp.ne.s32.totalorder %s467_s11, %s463_s10  ;;  %p45_p2 = scmp.eq.s32.totalorder %s479_s14, 0 }
   0x7   : > { %s644_s16 = smov (%p30_p0, %s28_s16), 0  ;;  %p50_p4 = scmp.ne.s32.totalorder %s463_s10, %s459_s9 }
   0x8   : > { %p534_p3 = por %p45_p2, %p44_p1  ;;  %s32_s19 = ssub.s32 %s475_s13, %s644_s16 }
   0x9   : > { %p51_p5 = scmp.eq.s32.totalorder %s328_s15, 0  ;;  %p35_p6 = scmp.eq.s32.totalorder %s32_s19, 0 }
   0xa   : > { %p348_p8 = scmp.lt.s32.totalorder %s479_s14, 2  ;;  %s126_s22 = sand.u32 1, %s467_s11  }
   0xb   : > { %p541_p7 = por %p51_p5, %p50_p4  ;;  %s341_s23 = sshll.u32 %s475_s13, 7 }
   0xc   : > { %s547_s21 = scalar_select %p35_p6, %s467_s11, %s37_s17  }
   0xd   : > { %s332_s24 = sshll.u32 %s126_s22, 3  ;;  %s554_s27 = scalar_lea.hbm %s630_s0, %s341_s23 }
   0xe   : > { %s130_s28 = scalar_lea.vmem [#allocation2], %s332_s24  ;;  %p558_p9 = pnand %p348_p8, %p534_p3 }
   0xf   : > { %s140_s29 = sshll.u32 %s130_s28, 4  ;;  %s127_s3 = scalar_lea.sflag [#allocation3], %s126_s22  ;;  %s562_s29 = int_to_ptr.vmem [resolvable:$true] %s140_s29 }
  0x10   : > { %s399_s4 = scalar_lea.hbm %s554_s27, 128  ;;  %p401_p13 = pneg %p558_p9 }
  0x11   : > { %p400_p12 = scmp.ne.s32.totalorder %s554_s27, %s399_s4  ;;  %s404_s7 = scalar_lea.hbm %s630_s0, 256 }
  0x12   : > { %p405_p2 = scmp.lt.u32.totalorder %s554_s27, %s630_s0  ;;  %p406_p3 = scmp.lt.u32.totalorder %s404_s7, %s399_s4 }
  0x13   : > { %p402_p0 = pnand %p401_p13, %p400_p12  ;;  %p408_p5 = scmp.lt.u32.totalorder %s399_s4, %s554_s27 }
  0x14   : > { %p407_p4 = por %p406_p3, %p405_p2 }
  0x15   : > { %p403_p1 = pneg %p402_p0 }
  0x16   : > { %p409_p6 = por %p408_p5, %p407_p4 }
  0x18   : > { %p410_p8 = pnand %p409_p6, %p403_p1 }
  0x1a   : > { %413 = shalt.err (!%p410_p8)
}
  0x1b   : > { %s414_s15 = scalar_lea.vmem %s562_s29, 128  ;;  %s481_s17 = smov [#allocation2]  }
  0x1c   : > { %p415_p12 = scmp.ne.s32.totalorder %s562_s29, %s414_s15  ;;  %s419_s18 = sshll.u32 %s481_s17, 4  ;;  %s420_s18 = int_to_ptr.vmem [resolvable:$false] %s419_s18 }
  0x1d   : > { %s421_s19 = scalar_lea.vmem %s420_s18, 256  ;;  %p422_p11 = scmp.lt.s32.totalorder %s562_s29, %s420_s18 }
  0x1e   : > { %p417_p0 = pnand %p415_p12, %p401_p13  ;;  %p423_p2 = scmp.lt.s32.totalorder %s421_s19, %s414_s15 }
  0x20   : > { %p418_p10 = pneg %p417_p0  ;;  %p424_p3 = por %p423_p2, %p422_p11 }
  0x22   : > { %p425_p4 = pnand %p424_p3, %p418_p10 }
  0x24   : > { %428 = shalt.err (!%p425_p4)
}
  0x25   : > { %347 = dma.hbm_to_vmem [thread:$0]  (!%p558_p9), %s554_s27, 128, %s562_s29, %s127_s3  }
  0x26   : > { %p636_p1 = scmp.lt.s32.totalorder %s479_s14, 3  ;;  %p637_p5 = scmp.ge.s32.totalorder %s479_s14, 1 }
  0x28   : > { %p146_p13 = pnand %p637_p5, %p636_p1 }
  0x29   : > { %s151_s22 = sand.u32 (!%p146_p13), 1, %s463_s10  }
  0x2a   : > { %149 = sbr.rel (%p146_p13) target bundleno = 205 (0xcd), region = 24  ;;  %s336_s23 = sshll.u32 (!%p146_p13), %s151_s22, 3 }
  0x2b   : > { %s152_s24 = scalar_lea.sflag (!%p146_p13), [#allocation3], %s151_s22  ;;  %s155_s25 = scalar_lea.vmem (!%p146_p13), [#allocation2], %s336_s23 }
  0x31   : > { %454 = dma.done.wait (%p541_p7), %s152_s24, 128  }
  0x32   : > { %456 = vsyncadd (%p541_p7), %s152_s24, 4294967168  ;;  %p180_p10 = scmp.lt.s32.totalorder %s471_s12, 1  ;;  %vm192_vm0 = vcmask 3072   ;;  %vm200_vm1 = vcmask 1043456   ;;  %v482_v0 = vmov 0.0   ;;  %v195_v1 = vld [vmem:[%s155_s25] sm:$0xff] }
  0x33   : > { %v198_v2 = vcombine.high %v195_v1, %v195_v1  ;;  %v201_v3 = vsel %vm200_vm1, %v195_v1, 0.0  ;;  %v210_v4 = vmul.f32 %v195_v1, %v195_v1 }
  0x34   : > { %s646_s12 = smov (!%p180_p10, %s471_s12), 1 }
  0x35   : > { %s337_s26 = sshll.u32 %s646_s12, 2  ;;  %v202_v5 = vsel %vm200_vm1, %v198_v2, 0.0  ;;  %v212_v6 = vcombine.high %v210_v4, %v210_v4  ;;  %v214_v7 = vsel %vm200_vm1, %v210_v4, 0.0 }
  0x36   : > { %s183_s29 = scalar_lea.vmem %s631_s1, %s337_s26  ;;  %v203_v8 = vadd.f32 %v202_v5, %v201_v3  ;;  %s187_s30 = scalar_lea.vmem %s632_s2, %s337_s26 }
  0x37   : > { %193 = vst.msk [vmem:[%s183_s29] sm:$0xf] %vm192_vm0, %v482_v0  ;;  %v215_v9 = vsel %vm200_vm1, %v212_v6, 0.0  ;;  %194 = vst.msk [vmem:[%s187_s30] sm:$0xf] %vm192_vm0, %v482_v0 }
  0x38   : > { %204 = vadd.xlane.f32.xlu0 %v203_v8  ;;  %v216_v10 = vadd.f32 %v215_v9, %v214_v7 }
  0x3c   : > { %217 = vadd.xlane.f32.xlu0 %v216_v10 }
  0x3e   : > { %v196_v11 = vld [vmem:[%s183_s29] sm:$0xf] }
  0x3f   : > { %v209_v14 = vld [vmem:[%s187_s30] sm:$0xf] }
  0xc5   : > { %v205_v12 = vpop.xlane.xlu0 %204 }
  0xc6   : > { %v206_v13 = vadd.f32 %v205_v12, %v196_v11 }
  0xc8   : > { %208 = vst.msk [vmem:[%s183_s29] sm:$0xf] %vm192_vm0, %v206_v13 }
  0xc9   : > { %v218_v15 = vpop.xlane.xlu0 %217 }
  0xca   : > { %v219_v16 = vadd.f32 %v218_v15, %v209_v14 }
  0xcc   : > { %220 = vst.msk [vmem:[%s187_s30] sm:$0xf] %vm192_vm0, %v219_v16 }
  0xcd PF: > { %s16_s14 = sadd.s32 1, %s479_s14   ;;  %s638_s9 = smov %s463_s10 }
  0xce   : > { %p13_p7 = scmp.ge.s32.totalorder %s16_s14, 4   ;;  %s639_s10 = smov %s467_s11 }
  0xcf   : > { %s640_s11 = smov %s547_s21  ;;  %s641_s12 = smov %s475_s13 }
  0xd0   : > { %s642_s13 = smov %s644_s16  ;;  %15 = sbr.rel (!%p13_p7) target bundleno = 4 (0x4), region = 80 }
  0xd7   :  { %254 = vsyncpa [#allocation3], 1 }
  0xd8   :  { %256 = vsyncpa [#allocation3 + $0x1], 1 }

</bundles_post_ra>
